<compile_context>
chip_gen: v7x
topology: tpu7x:2x2x1
jax: 0.10.0
libtpu: 0.0.40
codegen_flags: <defaults>
</compile_context>

<pallas_src>
import functools
import math

import jax
import jax.numpy as jnp
from jax.experimental import pallas as pl
from jax.experimental.pallas import tpu as pltpu


def _choose_time_block(L, B, target_rows=256, max_steps=32):
    """Pick timesteps-per-chunk.

    Single chunk if the whole sequence is small; otherwise the largest divisor
    t of L with t <= max_steps, t*B <= ~target_rows rows per matmul, and
    (t*B) % 8 == 0 so the (t*B, D)/(t*B, H) BlockSpecs satisfy TPU sublane
    tiling when there is more than one chunk.
    """
    if L * B <= max(target_rows, 8):
        return L
    t_target = min(L, max_steps, max(1, target_rows // max(B, 1)))
    for t in range(t_target, 0, -1):
        if L % t == 0 and (t * B) % 8 == 0:
            return t
    return L  # fallback: one whole-sequence chunk (block == full dim)


# -----------------------------------------------------------------------------
# Pallas kernel: one SRU layer, time-chunked.
#   x2_ref : (T_BLK*B, D)  chunk of flattened (time, batch) rows
#   w_ref  : (D, k*H)      resident weight, gate blocks [W0|W1|W2|(W3)]
#   p_ref  : (4, H)        [forget_wc, reset_wc, forget_bias, reset_bias]
#   c0_ref : (B, H)        initial memory cell (resident)
#   h2_ref : (T_BLK*B, H)  chunk of flattened output rows
#   cT_ref : (B, H)        final memory cell (resident output block)
#   c_scr  : (B, H) f32    memory cell carried across chunks
# -----------------------------------------------------------------------------
def sru_cell_kernel(x2_ref, w_ref, p_ref, c0_ref, h2_ref, cT_ref, c_scr,
                    *, H, k, T_BLK, B):
    @pl.when(pl.program_id(0) == 0)
    def _():
        c_scr[...] = c0_ref[...].astype(jnp.float32)

    # One MXU-shaped matmul for the whole chunk, native input dtype, f32 acc.
    x2d = x2_ref[...]                                           # (M, D)
    u = jnp.dot(x2d, w_ref[...],
                preferred_element_type=jnp.float32)             # (M, k*H) f32

    # Hoist chunk-invariant / loop-invariant work off the serial chain.
    p = p_ref[...].astype(jnp.float32)                          # (4, H)
    fw = jnp.broadcast_to(p[0:1, :], (B, H))                    # forget weight_c
    rw = jnp.broadcast_to(p[1:2, :], (B, H))                    # reset  weight_c
    u0 = u[:, 0:H]                                              # (M, H)
    v1 = u[:, H:2 * H] + p[2:3, :]                              # U1 + forget_bias
    v2 = u[:, 2 * H:3 * H] + p[3:4, :]                          # U2 + reset_bias
    # skip term: x' = x when k == 3 (input_size == output_size), else U3
    if k == 4:
        xp = u[:, 3 * H:4 * H]
    else:
        xp = x2d.astype(jnp.float32)

    c = c_scr[...]                                              # (B, H) f32 carry
    # Static unrolled recurrence: all slice offsets are compile-time constants.
    for t in range(T_BLK):
        r0, r1 = t * B, (t + 1) * B
        u0_t, v1_t, v2_t, xp_t = u0[r0:r1], v1[r0:r1], v2[r0:r1], xp[r0:r1]
        f_t = jax.nn.sigmoid(v1_t + c * fw)
        r_t = jax.nn.sigmoid(v2_t + c * rw)
        c = u0_t + (c - u0_t) * f_t
        # activation_type == 0  -> g(c_t) = c_t  (identity)
        h_t = xp_t + (c - xp_t) * r_t
        h2_ref[r0:r1, :] = h_t.astype(h2_ref.dtype)

    c_scr[...] = c
    cT_ref[...] = c.astype(cT_ref.dtype)   # resident block; final writeback once


def sru_layer_pallas(x, W, params, c0, *, H, k, t_blk=None):
    """One SRUCell forward.  x: (L, B, D), W: (D, k*H), params: (4, H), c0: (B, H)."""
    L, B, D = x.shape
    kH = k * H
    if k == 3 and D != H:
        raise ValueError(f"k == 3 requires input_size == hidden_size, got D={D}, H={H}")
    if t_blk is None:
        t_blk = _choose_time_block(L, B)
    assert L % t_blk == 0
    n_chunks = L // t_blk
    M = t_blk * B

    # Flatten (time, batch) so the kernel works on lane-dense 2-D row slabs.
    x2 = x.reshape(L * B, D)

    kernel = functools.partial(sru_cell_kernel, H=H, k=k, T_BLK=t_blk, B=B)
    h2, cT = pl.pallas_call(
        kernel,
        out_shape=(
            jax.ShapeDtypeStruct((L * B, H), x.dtype),
            jax.ShapeDtypeStruct((B, H), x.dtype),
        ),
        grid_spec=pltpu.PrefetchScalarGridSpec(
            num_scalar_prefetch=0,
            grid=(n_chunks,),
            in_specs=[
                pl.BlockSpec((M, D), lambda i: (i, 0)),     # x chunk (T_BLK*B rows)
                pl.BlockSpec((D, kH), lambda i: (0, 0)),    # weight (resident)
                pl.BlockSpec((4, H), lambda i: (0, 0)),     # [fw, rw, fb, rb]
                pl.BlockSpec((B, H), lambda i: (0, 0)),     # c0 (resident)
            ],
            out_specs=[
                pl.BlockSpec((M, H), lambda i: (i, 0)),     # h chunk slab
                pl.BlockSpec((B, H), lambda i: (0, 0)),     # c_final (resident)
            ],
            scratch_shapes=[pltpu.VMEM((B, H), jnp.float32)],   # carried memory cell
        ),
        compiler_params=pltpu.CompilerParams(
            dimension_semantics=("arbitrary",),             # time chunks are sequential
        ),
    )(x2, W, params, c0)
    return h2.reshape(L, B, H), cT


# -----------------------------------------------------------------------------
# Parameter init replicating SRUCell.reset_parameters (defaults, v1=False,
# dropout=0, rnn_dropout=0, layer_norm=False, rescale=False, highway_bias=0).
# Weight columns laid out as contiguous blocks [W0 | W1 | W2 | (W3)], each H wide
# (a column permutation of torch's interleaved (d, k) view — same semantics for
# synthetic weights).
# -----------------------------------------------------------------------------
def init_sru_cell_params(key, input_size, hidden_size, has_skip_term=True):
    H = hidden_size
    k = 4 if (has_skip_term and input_size != H) else 3
    kw, kc = jax.random.split(key)
    val_range = math.sqrt(3.0 / input_size)
    W = jax.random.uniform(kw, (input_size, k * H), jnp.float32,
                           minval=-val_range, maxval=val_range)
    weight_c = jax.random.uniform(kc, (2 * H,), jnp.float32,
                                  minval=-math.sqrt(3.0), maxval=math.sqrt(3.0))
    # v1=False rescaling of gate matrices and weight_c
    s = math.sqrt(0.5)
    W = W.at[:, H:3 * H].multiply(s)
    weight_c = weight_c * s
    bias = jnp.zeros((2 * H,), jnp.float32)  # highway_bias = 0
    params = jnp.stack([weight_c[:H], weight_c[H:], bias[:H], bias[H:]], axis=0)  # (4, H)
    return W, params, k


def sru_forward_pallas(x, layer_params, hidden_size):
    """Multi-layer SRU forward.  Returns (h, c_stack)."""
    L, B, _ = x.shape
    prevx = x
    cs = []
    for (W, params, k) in layer_params:
        c0 = jnp.zeros((B, hidden_size), x.dtype)
        h, cT = sru_layer_pallas(prevx, W, params, c0, H=hidden_size, k=k)
        prevx = h
        cs.append(cT)
    return prevx, jnp.stack(cs, axis=0)


# -----------------------------------------------------------------------------
# Pure-JAX reference (mirrors SRU_CPU_class python path) for verification.
# -----------------------------------------------------------------------------
def sru_layer_ref(x, W, params, c0, H, k):
    L, B, D = x.shape
    u = (x.reshape(L * B, D) @ W).reshape(L, B, k * H)
    u0, u1, u2 = u[..., :H], u[..., H:2 * H], u[..., 2 * H:3 * H]
    xp = u[..., 3 * H:4 * H] if k == 4 else x
    fw, rw, fb, rb = params[0], params[1], params[2], params[3]

    def step(c_prev, inp):
        u0t, u1t, u2t, xpt = inp
        f = jax.nn.sigmoid(u1t + fb + c_prev * fw)
        r = jax.nn.sigmoid(u2t + rb + c_prev * rw)
        c_t = u0t + (c_prev - u0t) * f
        h_t = xpt + (c_t - xpt) * r
        return c_t, h_t

    cT, h = jax.lax.scan(step, c0, (u0, u1, u2, xp))
    return h, cT


def sru_forward_ref(x, layer_params, hidden_size):
    L, B, _ = x.shape
    prevx = x
    cs = []
    for (W, params, k) in layer_params:
        c0 = jnp.zeros((B, hidden_size), x.dtype)
        h, cT = sru_layer_ref(prevx, W, params, c0, hidden_size, k)
        prevx = h
        cs.append(cT)
    return prevx, jnp.stack(cs, axis=0)


if __name__ == "__main__":
    seq_len, batch, input_size, hidden_size, num_layers = 8, 2, 16, 32, 2

    key = jax.random.PRNGKey(0)
    kx, *kl = jax.random.split(key, num_layers + 1)
    x = jax.random.normal(kx, (seq_len, batch, input_size), jnp.float32)

    layer_params = []
    in_sz = input_size
    for i in range(num_layers):
        W, params, k = init_sru_cell_params(kl[i], in_sz, hidden_size)
        layer_params.append((W, params, k))
        in_sz = hidden_size  # output_size of unidirectional cell

    h, c_stack = sru_forward_pallas(x, layer_params, hidden_size)
    h = jax.block_until_ready(h)
    c_stack = jax.block_until_ready(c_stack)

    h_ref, c_ref = sru_forward_ref(x, layer_params, hidden_size)
    assert h.shape == (seq_len, batch, hidden_size)
    assert c_stack.shape == (num_layers, batch, hidden_size)
    assert jnp.allclose(h, h_ref, rtol=1e-5, atol=1e-5)
    assert jnp.allclose(c_stack, c_ref, rtol=1e-5, atol=1e-5)

    print("KERNEL_OK")
</pallas_src>

<mosaic_0001>
module attributes {stable_mosaic.version = 11 : i64} {
  func.func @sru_cell_kernel(%arg0: i32, %arg1: memref<16x16xf32, #tpu.memory_space<vmem>>, %arg2: memref<16x128xf32, #tpu.memory_space<vmem>>, %arg3: memref<4x32xf32, #tpu.memory_space<vmem>>, %arg4: memref<2x32xf32, #tpu.memory_space<vmem>>, %arg5: memref<16x32xf32, #tpu.memory_space<vmem>>, %arg6: memref<2x32xf32, #tpu.memory_space<vmem>>, %arg7: memref<2x32xf32, #tpu.memory_space<vmem>>) attributes {dimension_semantics = [#tpu.dimension_semantics<arbitrary>], iteration_bounds = array<i64: 1>, scalar_prefetch = 0 : i64, scratch_operands = 1 : i64, tpu.core_type = #tpu.core_type<tc>, window_params = [{transform_indices = @transform_0, window_bounds = array<i64: 16, 16>}, {pipeline_mode = #tpu.pipeline_mode<synchronous>, transform_indices = @transform_1, window_bounds = array<i64: 16, 128>}, {pipeline_mode = #tpu.pipeline_mode<synchronous>, transform_indices = @transform_2, window_bounds = array<i64: 4, 32>}, {pipeline_mode = #tpu.pipeline_mode<synchronous>, transform_indices = @transform_3, window_bounds = array<i64: 2, 32>}, {transform_indices = @transform_4, window_bounds = array<i64: 16, 32>}, {pipeline_mode = #tpu.pipeline_mode<synchronous>, transform_indices = @transform_5, window_bounds = array<i64: 2, 32>}]} {
    %c0_i32 = arith.constant 0 : i32
    %0 = arith.cmpi eq, %arg0, %c0_i32 : i32
    %1 = arith.extui %0 : i1 to i32
    %c0_i32_0 = arith.constant 0 : i32
    %2 = arith.cmpi ne, %1, %c0_i32_0 : i32
    scf.if %2 {
      %c0_37 = arith.constant 0 : index
      %c0_38 = arith.constant 0 : index
      %226 = vector.load %arg4[%c0_37, %c0_38] : memref<2x32xf32, #tpu.memory_space<vmem>>, vector<2x32xf32>
      %c0_39 = arith.constant 0 : index
      %c0_40 = arith.constant 0 : index
      %227 = vector.load %arg7[%c0_39, %c0_40] : memref<2x32xf32, #tpu.memory_space<vmem>>, vector<2x32xf32>
      tpu.vector_store %arg7[%c0_39, %c0_40], %226 {strides = array<i32>} : memref<2x32xf32, #tpu.memory_space<vmem>>, vector<2x32xf32>,
    } else {
    }
    %c0 = arith.constant 0 : index
    %c0_1 = arith.constant 0 : index
    %3 = vector.load %arg1[%c0, %c0_1] : memref<16x16xf32, #tpu.memory_space<vmem>>, vector<16x16xf32>
    %c0_2 = arith.constant 0 : index
    %c0_3 = arith.constant 0 : index
    %4 = vector.load %arg2[%c0_2, %c0_3] : memref<16x128xf32, #tpu.memory_space<vmem>>, vector<16x128xf32>
    %cst = arith.constant dense<0.000000e+00> : vector<16x128xf32>
    %5 = tpu.matmul %3, %4, %cst {dimension_numbers = #tpu.dot_dimension_numbers<[1], [0], [0], [1], [0, 0, 1, 1], [], []>} : vector<16x16xf32>, vector<16x128xf32>, vector<16x128xf32> -> vector<16x128xf32>
    %c0_4 = arith.constant 0 : index
    %c0_5 = arith.constant 0 : index
    %6 = vector.load %arg3[%c0_4, %c0_5] : memref<4x32xf32, #tpu.memory_space<vmem>>, vector<4x32xf32>
    %7 = vector.extract_strided_slice %6 {offsets = [0, 0], sizes = [1, 32], strides = [1, 1]} : vector<4x32xf32> to vector<1x32xf32>
    %8 = vector.shape_cast %7 : vector<1x32xf32> to vector<1x32xf32>
    %9 = vector.broadcast %8 : vector<1x32xf32> to vector<2x32xf32>
    %10 = vector.extract_strided_slice %6 {offsets = [1, 0], sizes = [1, 32], strides = [1, 1]} : vector<4x32xf32> to vector<1x32xf32>
    %11 = vector.shape_cast %10 : vector<1x32xf32> to vector<1x32xf32>
    %12 = vector.broadcast %11 : vector<1x32xf32> to vector<2x32xf32>
    %13 = vector.extract_strided_slice %5 {offsets = [0, 0], sizes = [16, 32], strides = [1, 1]} : vector<16x128xf32> to vector<16x32xf32>
    %14 = vector.extract_strided_slice %5 {offsets = [0, 32], sizes = [16, 32], strides = [1, 1]} : vector<16x128xf32> to vector<16x32xf32>
    %15 = vector.extract_strided_slice %6 {offsets = [2, 0], sizes = [1, 32], strides = [1, 1]} : vector<4x32xf32> to vector<1x32xf32>
    %16 = vector.broadcast %15 : vector<1x32xf32> to vector<16x32xf32>
    %17 = arith.addf %14, %16 : vector<16x32xf32>
    %18 = vector.extract_strided_slice %5 {offsets = [0, 64], sizes = [16, 32], strides = [1, 1]} : vector<16x128xf32> to vector<16x32xf32>
    %19 = vector.extract_strided_slice %6 {offsets = [3, 0], sizes = [1, 32], strides = [1, 1]} : vector<4x32xf32> to vector<1x32xf32>
    %20 = vector.broadcast %19 : vector<1x32xf32> to vector<16x32xf32>
    %21 = arith.addf %18, %20 : vector<16x32xf32>
    %22 = vector.extract_strided_slice %5 {offsets = [0, 96], sizes = [16, 32], strides = [1, 1]} : vector<16x128xf32> to vector<16x32xf32>
    %c0_6 = arith.constant 0 : index
    %c0_7 = arith.constant 0 : index
    %23 = vector.load %arg7[%c0_6, %c0_7] : memref<2x32xf32, #tpu.memory_space<vmem>>, vector<2x32xf32>
    %24 = vector.extract_strided_slice %13 {offsets = [0, 0], sizes = [2, 32], strides = [1, 1]} : vector<16x32xf32> to vector<2x32xf32>
    %25 = vector.extract_strided_slice %17 {offsets = [0, 0], sizes = [2, 32], strides = [1, 1]} : vector<16x32xf32> to vector<2x32xf32>
    %26 = vector.extract_strided_slice %21 {offsets = [0, 0], sizes = [2, 32], strides = [1, 1]} : vector<16x32xf32> to vector<2x32xf32>
    %27 = vector.extract_strided_slice %22 {offsets = [0, 0], sizes = [2, 32], strides = [1, 1]} : vector<16x32xf32> to vector<2x32xf32>
    %28 = arith.mulf %23, %9 : vector<2x32xf32>
    %29 = arith.addf %25, %28 : vector<2x32xf32>
    %30 = arith.negf %29 : vector<2x32xf32>
    %31 = math.exp %30 : vector<2x32xf32>
    %cst_8 = arith.constant 1.000000e+00 : f32
    %32 = vector.broadcast %cst_8 : f32 to vector<2x32xf32>
    %33 = arith.addf %32, %31 : vector<2x32xf32>
    %34 = arith.divf %32, %33 : vector<2x32xf32>
    %35 = arith.mulf %23, %12 : vector<2x32xf32>
    %36 = arith.addf %26, %35 : vector<2x32xf32>
    %37 = arith.negf %36 : vector<2x32xf32>
    %38 = math.exp %37 : vector<2x32xf32>
    %cst_9 = arith.constant 1.000000e+00 : f32
    %39 = vector.broadcast %cst_9 : f32 to vector<2x32xf32>
    %40 = arith.addf %39, %38 : vector<2x32xf32>
    %41 = arith.divf %39, %40 : vector<2x32xf32>
    %42 = arith.subf %23, %24 : vector<2x32xf32>
    %43 = arith.mulf %42, %34 : vector<2x32xf32>
    %44 = arith.addf %24, %43 : vector<2x32xf32>
    %45 = arith.subf %44, %27 : vector<2x32xf32>
    %46 = arith.mulf %45, %41 : vector<2x32xf32>
    %47 = arith.addf %27, %46 : vector<2x32xf32>
    %c0_10 = arith.constant 0 : index
    %c0_11 = arith.constant 0 : index
    %48 = vector.load %arg5[%c0_10, %c0_11] : memref<16x32xf32, #tpu.memory_space<vmem>>, vector<2x32xf32>
    tpu.vector_store %arg5[%c0_10, %c0_11], %47 {strides = array<i32>} : memref<16x32xf32, #tpu.memory_space<vmem>>, vector<2x32xf32>,
    %49 = vector.extract_strided_slice %13 {offsets = [2, 0], sizes = [2, 32], strides = [1, 1]} : vector<16x32xf32> to vector<2x32xf32>
    %50 = vector.extract_strided_slice %17 {offsets = [2, 0], sizes = [2, 32], strides = [1, 1]} : vector<16x32xf32> to vector<2x32xf32>
    %51 = vector.extract_strided_slice %21 {offsets = [2, 0], sizes = [2, 32], strides = [1, 1]} : vector<16x32xf32> to vector<2x32xf32>
    %52 = vector.extract_strided_slice %22 {offsets = [2, 0], sizes = [2, 32], strides = [1, 1]} : vector<16x32xf32> to vector<2x32xf32>
    %53 = arith.mulf %44, %9 : vector<2x32xf32>
    %54 = arith.addf %50, %53 : vector<2x32xf32>
    %55 = arith.negf %54 : vector<2x32xf32>
    %56 = math.exp %55 : vector<2x32xf32>
    %cst_12 = arith.constant 1.000000e+00 : f32
    %57 = vector.broadcast %cst_12 : f32 to vector<2x32xf32>
    %58 = arith.addf %57, %56 : vector<2x32xf32>
    %59 = arith.divf %57, %58 : vector<2x32xf32>
    %60 = arith.mulf %44, %12 : vector<2x32xf32>
    %61 = arith.addf %51, %60 : vector<2x32xf32>
    %62 = arith.negf %61 : vector<2x32xf32>
    %63 = math.exp %62 : vector<2x32xf32>
    %cst_13 = arith.constant 1.000000e+00 : f32
    %64 = vector.broadcast %cst_13 : f32 to vector<2x32xf32>
    %65 = arith.addf %64, %63 : vector<2x32xf32>
    %66 = arith.divf %64, %65 : vector<2x32xf32>
    %67 = arith.subf %44, %49 : vector<2x32xf32>
    %68 = arith.mulf %67, %59 : vector<2x32xf32>
    %69 = arith.addf %49, %68 : vector<2x32xf32>
    %70 = arith.subf %69, %52 : vector<2x32xf32>
    %71 = arith.mulf %70, %66 : vector<2x32xf32>
    %72 = arith.addf %52, %71 : vector<2x32xf32>
    %c2 = arith.constant 2 : index
    %c0_14 = arith.constant 0 : index
    %73 = vector.load %arg5[%c2, %c0_14] : memref<16x32xf32, #tpu.memory_space<vmem>>, vector<2x32xf32>
    tpu.vector_store %arg5[%c2, %c0_14], %72 {strides = array<i32>} : memref<16x32xf32, #tpu.memory_space<vmem>>, vector<2x32xf32>,
    %74 = vector.extract_strided_slice %13 {offsets = [4, 0], sizes = [2, 32], strides = [1, 1]} : vector<16x32xf32> to vector<2x32xf32>
    %75 = vector.extract_strided_slice %17 {offsets = [4, 0], sizes = [2, 32], strides = [1, 1]} : vector<16x32xf32> to vector<2x32xf32>
    %76 = vector.extract_strided_slice %21 {offsets = [4, 0], sizes = [2, 32], strides = [1, 1]} : vector<16x32xf32> to vector<2x32xf32>
    %77 = vector.extract_strided_slice %22 {offsets = [4, 0], sizes = [2, 32], strides = [1, 1]} : vector<16x32xf32> to vector<2x32xf32>
    %78 = arith.mulf %69, %9 : vector<2x32xf32>
    %79 = arith.addf %75, %78 : vector<2x32xf32>
    %80 = arith.negf %79 : vector<2x32xf32>
    %81 = math.exp %80 : vector<2x32xf32>
    %cst_15 = arith.constant 1.000000e+00 : f32
    %82 = vector.broadcast %cst_15 : f32 to vector<2x32xf32>
    %83 = arith.addf %82, %81 : vector<2x32xf32>
    %84 = arith.divf %82, %83 : vector<2x32xf32>
    %85 = arith.mulf %69, %12 : vector<2x32xf32>
    %86 = arith.addf %76, %85 : vector<2x32xf32>
    %87 = arith.negf %86 : vector<2x32xf32>
    %88 = math.exp %87 : vector<2x32xf32>
    %cst_16 = arith.constant 1.000000e+00 : f32
    %89 = vector.broadcast %cst_16 : f32 to vector<2x32xf32>
    %90 = arith.addf %89, %88 : vector<2x32xf32>
    %91 = arith.divf %89, %90 : vector<2x32xf32>
    %92 = arith.subf %69, %74 : vector<2x32xf32>
    %93 = arith.mulf %92, %84 : vector<2x32xf32>
    %94 = arith.addf %74, %93 : vector<2x32xf32>
    %95 = arith.subf %94, %77 : vector<2x32xf32>
    %96 = arith.mulf %95, %91 : vector<2x32xf32>
    %97 = arith.addf %77, %96 : vector<2x32xf32>
    %c4 = arith.constant 4 : index
    %c0_17 = arith.constant 0 : index
    %98 = vector.load %arg5[%c4, %c0_17] : memref<16x32xf32, #tpu.memory_space<vmem>>, vector<2x32xf32>
    tpu.vector_store %arg5[%c4, %c0_17], %97 {strides = array<i32>} : memref<16x32xf32, #tpu.memory_space<vmem>>, vector<2x32xf32>,
    %99 = vector.extract_strided_slice %13 {offsets = [6, 0], sizes = [2, 32], strides = [1, 1]} : vector<16x32xf32> to vector<2x32xf32>
    %100 = vector.extract_strided_slice %17 {offsets = [6, 0], sizes = [2, 32], strides = [1, 1]} : vector<16x32xf32> to vector<2x32xf32>
    %101 = vector.extract_strided_slice %21 {offsets = [6, 0], sizes = [2, 32], strides = [1, 1]} : vector<16x32xf32> to vector<2x32xf32>
    %102 = vector.extract_strided_slice %22 {offsets = [6, 0], sizes = [2, 32], strides = [1, 1]} : vector<16x32xf32> to vector<2x32xf32>
    %103 = arith.mulf %94, %9 : vector<2x32xf32>
    %104 = arith.addf %100, %103 : vector<2x32xf32>
    %105 = arith.negf %104 : vector<2x32xf32>
    %106 = math.exp %105 : vector<2x32xf32>
    %cst_18 = arith.constant 1.000000e+00 : f32
    %107 = vector.broadcast %cst_18 : f32 to vector<2x32xf32>
    %108 = arith.addf %107, %106 : vector<2x32xf32>
    %109 = arith.divf %107, %108 : vector<2x32xf32>
    %110 = arith.mulf %94, %12 : vector<2x32xf32>
    %111 = arith.addf %101, %110 : vector<2x32xf32>
    %112 = arith.negf %111 : vector<2x32xf32>
    %113 = math.exp %112 : vector<2x32xf32>
    %cst_19 = arith.constant 1.000000e+00 : f32
    %114 = vector.broadcast %cst_19 : f32 to vector<2x32xf32>
    %115 = arith.addf %114, %113 : vector<2x32xf32>
    %116 = arith.divf %114, %115 : vector<2x32xf32>
    %117 = arith.subf %94, %99 : vector<2x32xf32>
    %118 = arith.mulf %117, %109 : vector<2x32xf32>
    %119 = arith.addf %99, %118 : vector<2x32xf32>
    %120 = arith.subf %119, %102 : vector<2x32xf32>
    %121 = arith.mulf %120, %116 : vector<2x32xf32>
    %122 = arith.addf %102, %121 : vector<2x32xf32>
    %c6 = arith.constant 6 : index
    %c0_20 = arith.constant 0 : index
    %123 = vector.load %arg5[%c6, %c0_20] : memref<16x32xf32, #tpu.memory_space<vmem>>, vector<2x32xf32>
    tpu.vector_store %arg5[%c6, %c0_20], %122 {strides = array<i32>} : memref<16x32xf32, #tpu.memory_space<vmem>>, vector<2x32xf32>,
    %124 = vector.extract_strided_slice %13 {offsets = [8, 0], sizes = [2, 32], strides = [1, 1]} : vector<16x32xf32> to vector<2x32xf32>
    %125 = vector.extract_strided_slice %17 {offsets = [8, 0], sizes = [2, 32], strides = [1, 1]} : vector<16x32xf32> to vector<2x32xf32>
    %126 = vector.extract_strided_slice %21 {offsets = [8, 0], sizes = [2, 32], strides = [1, 1]} : vector<16x32xf32> to vector<2x32xf32>
    %127 = vector.extract_strided_slice %22 {offsets = [8, 0], sizes = [2, 32], strides = [1, 1]} : vector<16x32xf32> to vector<2x32xf32>
    %128 = arith.mulf %119, %9 : vector<2x32xf32>
    %129 = arith.addf %125, %128 : vector<2x32xf32>
    %130 = arith.negf %129 : vector<2x32xf32>
    %131 = math.exp %130 : vector<2x32xf32>
    %cst_21 = arith.constant 1.000000e+00 : f32
    %132 = vector.broadcast %cst_21 : f32 to vector<2x32xf32>
    %133 = arith.addf %132, %131 : vector<2x32xf32>
    %134 = arith.divf %132, %133 : vector<2x32xf32>
    %135 = arith.mulf %119, %12 : vector<2x32xf32>
    %136 = arith.addf %126, %135 : vector<2x32xf32>
    %137 = arith.negf %136 : vector<2x32xf32>
    %138 = math.exp %137 : vector<2x32xf32>
    %cst_22 = arith.constant 1.000000e+00 : f32
    %139 = vector.broadcast %cst_22 : f32 to vector<2x32xf32>
    %140 = arith.addf %139, %138 : vector<2x32xf32>
    %141 = arith.divf %139, %140 : vector<2x32xf32>
    %142 = arith.subf %119, %124 : vector<2x32xf32>
    %143 = arith.mulf %142, %134 : vector<2x32xf32>
    %144 = arith.addf %124, %143 : vector<2x32xf32>
    %145 = arith.subf %144, %127 : vector<2x32xf32>
    %146 = arith.mulf %145, %141 : vector<2x32xf32>
    %147 = arith.addf %127, %146 : vector<2x32xf32>
    %c8 = arith.constant 8 : index
    %c0_23 = arith.constant 0 : index
    %148 = vector.load %arg5[%c8, %c0_23] : memref<16x32xf32, #tpu.memory_space<vmem>>, vector<2x32xf32>
    tpu.vector_store %arg5[%c8, %c0_23], %147 {strides = array<i32>} : memref<16x32xf32, #tpu.memory_space<vmem>>, vector<2x32xf32>,
    %149 = vector.extract_strided_slice %13 {offsets = [10, 0], sizes = [2, 32], strides = [1, 1]} : vector<16x32xf32> to vector<2x32xf32>
    %150 = vector.extract_strided_slice %17 {offsets = [10, 0], sizes = [2, 32], strides = [1, 1]} : vector<16x32xf32> to vector<2x32xf32>
    %151 = vector.extract_strided_slice %21 {offsets = [10, 0], sizes = [2, 32], strides = [1, 1]} : vector<16x32xf32> to vector<2x32xf32>
    %152 = vector.extract_strided_slice %22 {offsets = [10, 0], sizes = [2, 32], strides = [1, 1]} : vector<16x32xf32> to vector<2x32xf32>
    %153 = arith.mulf %144, %9 : vector<2x32xf32>
    %154 = arith.addf %150, %153 : vector<2x32xf32>
    %155 = arith.negf %154 : vector<2x32xf32>
    %156 = math.exp %155 : vector<2x32xf32>
    %cst_24 = arith.constant 1.000000e+00 : f32
    %157 = vector.broadcast %cst_24 : f32 to vector<2x32xf32>
    %158 = arith.addf %157, %156 : vector<2x32xf32>
    %159 = arith.divf %157, %158 : vector<2x32xf32>
    %160 = arith.mulf %144, %12 : vector<2x32xf32>
    %161 = arith.addf %151, %160 : vector<2x32xf32>
    %162 = arith.negf %161 : vector<2x32xf32>
    %163 = math.exp %162 : vector<2x32xf32>
    %cst_25 = arith.constant 1.000000e+00 : f32
    %164 = vector.broadcast %cst_25 : f32 to vector<2x32xf32>
    %165 = arith.addf %164, %163 : vector<2x32xf32>
    %166 = arith.divf %164, %165 : vector<2x32xf32>
    %167 = arith.subf %144, %149 : vector<2x32xf32>
    %168 = arith.mulf %167, %159 : vector<2x32xf32>
    %169 = arith.addf %149, %168 : vector<2x32xf32>
    %170 = arith.subf %169, %152 : vector<2x32xf32>
    %171 = arith.mulf %170, %166 : vector<2x32xf32>
    %172 = arith.addf %152, %171 : vector<2x32xf32>
    %c10 = arith.constant 10 : index
    %c0_26 = arith.constant 0 : index
    %173 = vector.load %arg5[%c10, %c0_26] : memref<16x32xf32, #tpu.memory_space<vmem>>, vector<2x32xf32>
    tpu.vector_store %arg5[%c10, %c0_26], %172 {strides = array<i32>} : memref<16x32xf32, #tpu.memory_space<vmem>>, vector<2x32xf32>,
    %174 = vector.extract_strided_slice %13 {offsets = [12, 0], sizes = [2, 32], strides = [1, 1]} : vector<16x32xf32> to vector<2x32xf32>
    %175 = vector.extract_strided_slice %17 {offsets = [12, 0], sizes = [2, 32], strides = [1, 1]} : vector<16x32xf32> to vector<2x32xf32>
    %176 = vector.extract_strided_slice %21 {offsets = [12, 0], sizes = [2, 32], strides = [1, 1]} : vector<16x32xf32> to vector<2x32xf32>
    %177 = vector.extract_strided_slice %22 {offsets = [12, 0], sizes = [2, 32], strides = [1, 1]} : vector<16x32xf32> to vector<2x32xf32>
    %178 = arith.mulf %169, %9 : vector<2x32xf32>
    %179 = arith.addf %175, %178 : vector<2x32xf32>
    %180 = arith.negf %179 : vector<2x32xf32>
    %181 = math.exp %180 : vector<2x32xf32>
    %cst_27 = arith.constant 1.000000e+00 : f32
    %182 = vector.broadcast %cst_27 : f32 to vector<2x32xf32>
    %183 = arith.addf %182, %181 : vector<2x32xf32>
    %184 = arith.divf %182, %183 : vector<2x32xf32>
    %185 = arith.mulf %169, %12 : vector<2x32xf32>
    %186 = arith.addf %176, %185 : vector<2x32xf32>
    %187 = arith.negf %186 : vector<2x32xf32>
    %188 = math.exp %187 : vector<2x32xf32>
    %cst_28 = arith.constant 1.000000e+00 : f32
    %189 = vector.broadcast %cst_28 : f32 to vector<2x32xf32>
    %190 = arith.addf %189, %188 : vector<2x32xf32>
    %191 = arith.divf %189, %190 : vector<2x32xf32>
    %192 = arith.subf %169, %174 : vector<2x32xf32>
    %193 = arith.mulf %192, %184 : vector<2x32xf32>
    %194 = arith.addf %174, %193 : vector<2x32xf32>
    %195 = arith.subf %194, %177 : vector<2x32xf32>
    %196 = arith.mulf %195, %191 : vector<2x32xf32>
    %197 = arith.addf %177, %196 : vector<2x32xf32>
    %c12 = arith.constant 12 : index
    %c0_29 = arith.constant 0 : index
    %198 = vector.load %arg5[%c12, %c0_29] : memref<16x32xf32, #tpu.memory_space<vmem>>, vector<2x32xf32>
    tpu.vector_store %arg5[%c12, %c0_29], %197 {strides = array<i32>} : memref<16x32xf32, #tpu.memory_space<vmem>>, vector<2x32xf32>,
    %199 = vector.extract_strided_slice %13 {offsets = [14, 0], sizes = [2, 32], strides = [1, 1]} : vector<16x32xf32> to vector<2x32xf32>
    %200 = vector.extract_strided_slice %17 {offsets = [14, 0], sizes = [2, 32], strides = [1, 1]} : vector<16x32xf32> to vector<2x32xf32>
    %201 = vector.extract_strided_slice %21 {offsets = [14, 0], sizes = [2, 32], strides = [1, 1]} : vector<16x32xf32> to vector<2x32xf32>
    %202 = vector.extract_strided_slice %22 {offsets = [14, 0], sizes = [2, 32], strides = [1, 1]} : vector<16x32xf32> to vector<2x32xf32>
    %203 = arith.mulf %194, %9 : vector<2x32xf32>
    %204 = arith.addf %200, %203 : vector<2x32xf32>
    %205 = arith.negf %204 : vector<2x32xf32>
    %206 = math.exp %205 : vector<2x32xf32>
    %cst_30 = arith.constant 1.000000e+00 : f32
    %207 = vector.broadcast %cst_30 : f32 to vector<2x32xf32>
    %208 = arith.addf %207, %206 : vector<2x32xf32>
    %209 = arith.divf %207, %208 : vector<2x32xf32>
    %210 = arith.mulf %194, %12 : vector<2x32xf32>
    %211 = arith.addf %201, %210 : vector<2x32xf32>
    %212 = arith.negf %211 : vector<2x32xf32>
    %213 = math.exp %212 : vector<2x32xf32>
    %cst_31 = arith.constant 1.000000e+00 : f32
    %214 = vector.broadcast %cst_31 : f32 to vector<2x32xf32>
    %215 = arith.addf %214, %213 : vector<2x32xf32>
    %216 = arith.divf %214, %215 : vector<2x32xf32>
    %217 = arith.subf %194, %199 : vector<2x32xf32>
    %218 = arith.mulf %217, %209 : vector<2x32xf32>
    %219 = arith.addf %199, %218 : vector<2x32xf32>
    %220 = arith.subf %219, %202 : vector<2x32xf32>
    %221 = arith.mulf %220, %216 : vector<2x32xf32>
    %222 = arith.addf %202, %221 : vector<2x32xf32>
    %c14 = arith.constant 14 : index
    %c0_32 = arith.constant 0 : index
    %223 = vector.load %arg5[%c14, %c0_32] : memref<16x32xf32, #tpu.memory_space<vmem>>, vector<2x32xf32>
    tpu.vector_store %arg5[%c14, %c0_32], %222 {strides = array<i32>} : memref<16x32xf32, #tpu.memory_space<vmem>>, vector<2x32xf32>,
    %c0_33 = arith.constant 0 : index
    %c0_34 = arith.constant 0 : index
    %224 = vector.load %arg7[%c0_33, %c0_34] : memref<2x32xf32, #tpu.memory_space<vmem>>, vector<2x32xf32>
    tpu.vector_store %arg7[%c0_33, %c0_34], %219 {strides = array<i32>} : memref<2x32xf32, #tpu.memory_space<vmem>>, vector<2x32xf32>,
    %c0_35 = arith.constant 0 : index
    %c0_36 = arith.constant 0 : index
    %225 = vector.load %arg6[%c0_35, %c0_36] : memref<2x32xf32, #tpu.memory_space<vmem>>, vector<2x32xf32>
    tpu.vector_store %arg6[%c0_35, %c0_36], %219 {strides = array<i32>} : memref<2x32xf32, #tpu.memory_space<vmem>>, vector<2x32xf32>,
    return
  }
  func.func @transform_0(%arg0: i32) -> (i32, i32) {
    %c0_i32 = arith.constant 0 : i32
    %c0_i32_0 = arith.constant 0 : i32
    return %arg0, %c0_i32 : i32, i32
  }
  func.func @transform_1(%arg0: i32) -> (i32, i32) {
    %c0_i32 = arith.constant 0 : i32
    %c0_i32_0 = arith.constant 0 : i32
    %c0_i32_1 = arith.constant 0 : i32
    return %c0_i32, %c0_i32_0 : i32, i32
  }
  func.func @transform_2(%arg0: i32) -> (i32, i32) {
    %c0_i32 = arith.constant 0 : i32
    %c0_i32_0 = arith.constant 0 : i32
    %c0_i32_1 = arith.constant 0 : i32
    return %c0_i32, %c0_i32_0 : i32, i32
  }
  func.func @transform_3(%arg0: i32) -> (i32, i32) {
    %c0_i32 = arith.constant 0 : i32
    %c0_i32_0 = arith.constant 0 : i32
    %c0_i32_1 = arith.constant 0 : i32
    return %c0_i32, %c0_i32_0 : i32, i32
  }
  func.func @transform_4(%arg0: i32) -> (i32, i32) {
    %c0_i32 = arith.constant 0 : i32
    %c0_i32_0 = arith.constant 0 : i32
    return %arg0, %c0_i32 : i32, i32
  }
  func.func @transform_5(%arg0: i32) -> (i32, i32) {
    %c0_i32 = arith.constant 0 : i32
    %c0_i32_0 = arith.constant 0 : i32
    %c0_i32_1 = arith.constant 0 : i32
    return %c0_i32, %c0_i32_0 : i32, i32
  }
}

</mosaic_0001>

<bundles_post_ra>
// kernel: tpu_custom_call.1
= control target key start
LH: loop header
LB: loop body
LE: loop exit
PB: predicated region body
PF: predicated region fallthrough
CT: control target
= control target key end

     0   :  { %11 = vsyncpa [#allocation4], 0  ;;  %s1125_s0 = inlined_call_operand.hbm [shape: f32[16,16], index: 0, kind: input, shape index: {}]   ;;  %s1126_s1 = inlined_call_operand.hbm [shape: f32[16,128], index: 1, kind: input, shape index: {}]   ;;  %s1127_s2 = inlined_call_operand.vmem [shape: f32[4,32], index: 2, kind: input, shape index: {}]   ;;  %s1128_s3 = inlined_call_operand.vmem [shape: f32[2,32], index: 3, kind: input, shape index: {}]   ;;  %s1129_s4 = inlined_call_operand.hbm [shape: f32[16,32], index: 4, kind: output, shape index: {0}]   ;;  %s1130_s5 = inlined_call_operand.hbm [shape: f32[2,32], index: 5, kind: output, shape index: {1}]  }
   0x1   :  { %12 = vsyncpa [#allocation7], 0 }
   0x2   :  { %13 = vsyncpa [#allocation5], 0 }
   0x3   :  { %14 = vsyncpa [#allocation10], 0  ;;  %s842_s18 = smov [#allocation3]   ;;  %s746_s22 = scalar_lea.hbm %s1125_s0, 256 }
   0x4   :  { %s20_s19 = sshll.u32 %s842_s18, 4  ;;  %p747_p0 = scmp.ne.s32.totalorder %s1125_s0, %s746_s22  ;;  %s21_s19 = int_to_ptr.vmem [resolvable:$true] %s20_s19 }
   0x5   :  { %p750_p1 = scmp.lt.u32.totalorder %s746_s22, %s1125_s0 }
   0x7   :  { %p752_p2 = pnand %p750_p1, %p747_p0 }
   0x9   :  { %755 = shalt.err (!%p752_p2)
}
   0xa   :  { %s756_s27 = scalar_lea.vmem %s21_s19, 256  ;;  %p761_p4 = scmp.lt.s32.totalorder %s21_s19, %s21_s19 }
   0xb   :  { %p757_p3 = scmp.ne.s32.totalorder %s21_s19, %s756_s27  ;;  %p762_p5 = scmp.lt.s32.totalorder %s756_s27, %s756_s27 }
   0xd   :  { %p763_p6 = por %p762_p5, %p761_p4 }
   0xf   :  { %p764_p7 = pnand %p763_p6, %p757_p3 }
  0x11   :  { %767 = shalt.err (!%p764_p7)
}
  0x12   :  { %s843_s28 = smov 128   ;;  %s844_s29 = smov 8  }
  0x13   :  { %26 = dma.hbm_to_vmem [thread:$0]  %s1125_s0, 256, %s21_s19, [#allocation4], %s843_s28, %s843_s28, %s844_s29  }
  0x14   :  { %s845_s7 = smov [#allocation6]   ;;  %s768_s11 = scalar_lea.hbm %s1126_s1, 256 }
  0x15   :  { %s32_s8 = sshll.u32 %s845_s7, 4  ;;  %p769_p8 = scmp.ne.s32.totalorder %s1126_s1, %s768_s11  ;;  %s33_s8 = int_to_ptr.vmem [resolvable:$true] %s32_s8 }
  0x16   :  { %p772_p9 = scmp.lt.u32.totalorder %s768_s11, %s1126_s1 }
  0x18   :  { %p774_p10 = pnand %p772_p9, %p769_p8 }
  0x1a   :  { %777 = shalt.err (!%p774_p10)
}
  0x1b   :  { %s778_s16 = scalar_lea.vmem %s33_s8, 256  ;;  %p783_p12 = scmp.lt.s32.totalorder %s33_s8, %s33_s8 }
  0x1c   :  { %p779_p11 = scmp.ne.s32.totalorder %s33_s8, %s778_s16  ;;  %p784_p13 = scmp.lt.s32.totalorder %s778_s16, %s778_s16 }
  0x1e   :  { %p785_p0 = por %p784_p13, %p783_p12 }
  0x20   :  { %p786_p1 = pnand %p785_p0, %p779_p11 }
  0x22   :  { %789 = shalt.err (!%p786_p1)
}
  0x23   :  { %38 = dma.hbm_to_vmem [thread:$0]  %s1126_s1, 256, %s33_s8, [#allocation7], %s843_s28, %s843_s28, %s844_s29  }
  0x24   :  { %834 = dma.done.wait [#allocation4], 256  }
  0x25   :  { %835 = vsyncadd [#allocation4], 4294967040 }
  0x26   :  { %836 = dma.done.wait [#allocation7], 256  }
  0x27   :  { %837 = vsyncadd [#allocation7], 4294967040  ;;  %v143_v0 = vlaneseq  ;;  %vm60_vm0 = vcmask 130048   ;;  %vm54_vm1 = vcmask 254976   ;;  %v58_v3 = vld [vmem:[#allocation6] sm:$0xff]  ;;  %v59_v4 = vld [vmem:[#allocation6 + $0x8] sm:$0xff] }
  0x28   :  { %v56_v5 = vld [vmem:[#allocation3] sm:$0xff]  ;;  %v669_v6 = vpack.c.bf16 %v59_v4, %v58_v3  ;;  %v53_v8 = vld [vmem:[%s1128_s3] sm:$0x3]  ;;  %v57_v11 = vld [vmem:[#allocation3 + $0x8] sm:$0xff]  ;;  %s846_s21 = smov 32   ;;  %s848_s3 = smov 64  }
  0x29   :  { %v911_v1 = vshrl.u32 %v143_v0, 7  ;;  %666 = vmatprep.mubr.msk.f32.mxu0 %vm60_vm0, %v56_v5  ;;  %v918_v7 = vld [vmem:[%s1127_s2] sm:$0xf]  ;;  %55 = vst.msk [vmem:[#allocation2] sm:$0x3] %vm54_vm1, %v53_v8  ;;  %s847_s2 = smov 96  }
  0x2a   :  { %670 = vmatprep.subr.bf16.mxu0 %v669_v6  ;;  %vm386_vm2 = vcmask 261126   ;;  %s849_s22 = smov [#allocation9]  }
  0x2b   :  { %v153_v2 = vsub.s32 2, %v911_v1  ;;  %v145_v9 = vsub.s32 0, %v911_v1  ;;  %672 = vmatpush3.bf16.msra.mxu0 %v669_v6  ;;  %s626_s23 = sshll.u32 %s849_s22, 4  ;;  %s627_s23 = int_to_ptr.vmem [resolvable:$true] %s626_s23 }
  0x2c   :  { %s790_s24 = scalar_lea.vmem %s627_s23, 32  ;;  %p795_p3 = scmp.lt.s32.totalorder %s627_s23, %s627_s23 }
  0x2d   :  { %v154_v10 = vrot.slane %v918_v7, %v153_v2  ;;  %v928_v12 = vrot.slane %v918_v7, %v145_v9  ;;  %p791_p2 = scmp.ne.s32.totalorder %s627_s23, %s790_s24  ;;  %p796_p4 = scmp.lt.s32.totalorder %s790_s24, %s790_s24 }
  0x2e   :  { %667 = vmatmul.mubr.msk.f32.vlgmr.msra.gmra.mrb[0].mxu0 %vm60_vm0, %v57_v11 }
  0x2f   :  { %156 = vrot.lane.b32.xlu0 %v154_v10, %s846_s21  ;;  %p797_p5 = por %p796_p4, %p795_p3 }
  0x30   :  { %v931_v13 = vld [vmem:[#allocation2] sm:$0x3] }
  0x31   :  { %v172_v14 = vmul.f32 %v931_v13, %v928_v12  ;;  %p798_p6 = pnand %p797_p5, %p791_p2 }
  0x33   :  { %174 = vrot.lane.b32.xlu0 %v172_v14, %s846_s21 }
  0xa1   :  { %v936_v15 = vpop.permute.xlu0 %156 }
  0xa5   :  { %v175_v18 = vpop.permute.xlu0 %174 }
 0x101   :  { %v938_v16 = vpop.f32.mrb[0].mxu0 }
 0x102   :  { %v940_v17 = vpop.f32.mrb[1].mxu0  ;;  %v980_v14 = vadd.f32 %v938_v16, %v936_v15 }
 0x103   :  { %v159_v19 = vadd.f32 %v936_v15, %v940_v17  ;;  %v196_v25 = vsub.f32 %v931_v13, %v940_v17  ;;  %v250_v38 = vrot.slane %v940_v17, 2 }
 0x105   :  { %v177_v20 = vadd.f32 %v175_v18, %v159_v19 }
 0x107   :  { %v642_v21 = vmul.f32 -1.442695, %v177_v20 }
 0x109   :  { %682 = vpow2.f32 %v642_v21 }
 0x113   :  { %v683_v22 = vpop.eup %682 }
 0x114   :  { %v181_v23 = vadd.f32 1.0, %v683_v22 }
 0x116   :  { %684 = vrcp.f32 %v181_v23 }
 0x120   :  { %v685_v24 = vpop.eup %684 }
 0x121   :  { %198 = vrot.lane.b32.xlu1 %v685_v24, %s847_s2 }
 0x193   :  { %v199_v26 = vpop.permute.xlu1 %198 }
 0x194   :  { %v201_v27 = vmul.f32 %v199_v26, %v196_v25  ;;  %v985_v25 = vrot.slane %v938_v16, 2 }
 0x196   :  { %v948_v28 = vadd.f32 %v201_v27, %v940_v17 }
 0x198   :  { %v224_v29 = vmul.f32 %v948_v28, %v928_v12  ;;  %v252_v39 = vsub.f32 %v948_v28, %v250_v38 }
 0x19a   :  { %v226_v30 = vrot.slane %v224_v29, 6 }
 0x19c   :  { %227 = vrot.lane.b32.xlu1 %v226_v30, %s846_s21 }
 0x20e   :  { %v228_v31 = vpop.permute.xlu1 %227 }
 0x20f   :  { %v230_v32 = vadd.f32 %v228_v31, %v159_v19 }
 0x211   :  { %v644_v33 = vmul.f32 -1.442695, %v230_v32 }
 0x213   :  { %686 = vpow2.f32 %v644_v33 }
 0x21d   :  { %v687_v34 = vpop.eup %686 }
 0x21e   :  { %v234_v35 = vadd.f32 1.0, %v687_v34 }
 0x220   :  { %688 = vrcp.f32 %v234_v35 }
 0x22a   :  { %v689_v36 = vpop.eup %688 }
 0x22b   :  { %v254_v37 = vrot.slane %v689_v36, 2 }
 0x22d   :  { %255 = vrot.lane.b32.xlu0 %v254_v37, %s847_s2 }
 0x29f   :  { %v256_v40 = vpop.permute.xlu0 %255 }
 0x2a0   :  { %v258_v41 = vmul.f32 %v256_v40, %v252_v39 }
 0x2a2   :  { %v260_v42 = vrot.slane %v258_v41, 6 }
 0x2a4   :  { %v957_v43 = vadd.f32 %v260_v42, %v940_v17 }
 0x2a6   :  { %v280_v44 = vmul.f32 %v957_v43, %v928_v12  ;;  %v306_v53 = vsub.f32 %v957_v43, %v250_v38 }
 0x2a8   :  { %v282_v45 = vrot.slane %v280_v44, 6 }
 0x2aa   :  { %283 = vrot.lane.b32.xlu1 %v282_v45, %s846_s21 }
 0x31c   :  { %v284_v46 = vpop.permute.xlu1 %283 }
 0x31d   :  { %v286_v47 = vadd.f32 %v284_v46, %v159_v19 }
 0x31f   :  { %v646_v48 = vmul.f32 -1.442695, %v286_v47 }
 0x321   :  { %690 = vpow2.f32 %v646_v48  ;;  %v149_v48 = vsub.s32 1, %v911_v1 }
 0x32b   :  { %v691_v49 = vpop.eup %690 }
 0x32c   :  { %v290_v50 = vadd.f32 1.0, %v691_v49  ;;  %v150_v49 = vrot.slane %v918_v7, %v149_v48 }
 0x32e   :  { %692 = vrcp.f32 %v290_v50  ;;  %v184_v50 = vmul.f32 %v931_v13, %v150_v49  ;;  %v237_v13 = vmul.f32 %v948_v28, %v150_v49 }
 0x338   :  { %v693_v51 = vpop.eup %692 }
 0x339   :  { %v308_v52 = vrot.slane %v693_v51, 2 }
 0x33b   :  { %309 = vrot.lane.b32.xlu0 %v308_v52, %s847_s2 }
 0x3ad   :  { %v310_v54 = vpop.permute.xlu0 %309 }
 0x3ae   :  { %v312_v55 = vmul.f32 %v310_v54, %v306_v53 }
 0x3b0   :  { %v314_v56 = vrot.slane %v312_v55, 6 }
 0x3b2   :  { %v965_v57 = vadd.f32 %v314_v56, %v940_v17  ;;  %v163_v56 = vsub.s32 3, %v911_v1 }
 0x3b4   :  { %v334_v58 = vmul.f32 %v965_v57, %v928_v12  ;;  %v360_v4 = vsub.f32 %v965_v57, %v250_v38 }
 0x3b6   :  { %v336_v59 = vrot.slane %v334_v58, 6 }
 0x3b8   :  { %337 = vrot.lane.b32.xlu1 %v336_v59, %s846_s21 }
 0x42a   :  { %v338_v60 = vpop.permute.xlu1 %337 }
 0x42b   :  { %v340_v61 = vadd.f32 %v338_v60, %v159_v19  ;;  %v164_v60 = vrot.slane %v918_v7, %v163_v56 }
 0x42d   :  { %v648_v62 = vmul.f32 -1.442695, %v340_v61  ;;  %v239_v61 = vrot.slane %v237_v13, 6 }
 0x42f   :  { %694 = vpow2.f32 %v648_v62  ;;  %v347_v62 = vmul.f32 %v965_v57, %v150_v49 }
 0x439   :  { %v695_v63 = vpop.eup %694 }
 0x43a   :  { %v344_v0 = vadd.f32 1.0, %v695_v63  ;;  %v349_v63 = vrot.slane %v347_v62, 6 }
 0x43c   :  { %696 = vrcp.f32 %v344_v0 }
 0x446   :  { %v697_v2 = vpop.eup %696 }
 0x447   :  { %v362_v3 = vrot.slane %v697_v2, 2 }
 0x449   :  { %363 = vrot.lane.b32.xlu0 %v362_v3, %s847_s2 }
 0x4bb   :  { %v364_v5 = vpop.permute.xlu0 %363 }
 0x4bc   :  { %v366_v6 = vmul.f32 %v364_v5, %v360_v4 }
 0x4be   :  { %v368_v8 = vrot.slane %v366_v6, 6 }
 0x4c0   :  { %v973_v9 = vadd.f32 %v368_v8, %v940_v17 }
 0x4c2   :  { %v388_v10 = vmul.f32 %v973_v9, %v928_v12  ;;  %v417_v26 = vsub.f32 %v973_v9, %v985_v25 }
 0x4c4   :  { %v390_v11 = vrot.slane %v388_v10, 6 }
 0x4c6   :  { %391 = vrot.lane.b32.xlu1 %v390_v11, %s846_s21 }
 0x538   :  { %v392_v18 = vpop.permute.xlu1 %391 }
 0x539   :  { %v394_v19 = vadd.f32 %v392_v18, %v980_v14 }
 0x53b   :  { %v650_v20 = vmul.f32 -1.442695, %v394_v19 }
 0x53d   :  { %698 = vpow2.f32 %v650_v20 }
 0x547   :  { %v699_v21 = vpop.eup %698 }
 0x548   :  { %v398_v22 = vadd.f32 1.0, %v699_v21 }
 0x54a   :  { %700 = vrcp.f32 %v398_v22  ;;  %v293_v22 = vmul.f32 %v957_v43, %v150_v49 }
 0x554   :  { %v701_v23 = vpop.eup %700 }
 0x555   :  { %v419_v24 = vrot.slane %v701_v23, 2 }
 0x557   :  { %420 = vrot.lane.b32.xlu0 %v419_v24, %s847_s2 }
 0x5c9   :  { %v421_v15 = vpop.permute.xlu0 %420 }
 0x5ca   :  { %v423_v27 = vmul.f32 %v421_v15, %v417_v26 }
 0x5cc   :  { %v425_v29 = vrot.slane %v423_v27, 6 }
 0x5ce   :  { %v990_v30 = vadd.f32 %v938_v16, %v425_v29 }
 0x5d0   :  { %v447_v31 = vmul.f32 %v990_v30, %v928_v12  ;;  %v473_v40 = vsub.f32 %v990_v30, %v985_v25  ;;  %v460_v0 = vmul.f32 %v990_v30, %v150_v49 }
 0x5d2   :  { %v449_v32 = vrot.slane %v447_v31, 6  ;;  %v462_v1 = vrot.slane %v460_v0, 6 }
 0x5d4   :  { %450 = vrot.lane.b32.xlu1 %v449_v32, %s846_s21  ;;  %v295_v32 = vrot.slane %v293_v22, 6 }
 0x646   :  { %v451_v33 = vpop.permute.xlu1 %450 }
 0x647   :  { %v453_v34 = vadd.f32 %v451_v33, %v980_v14  ;;  %v401_v33 = vmul.f32 %v973_v9, %v150_v49 }
 0x649   :  { %v652_v35 = vmul.f32 -1.442695, %v453_v34  ;;  %v403_v34 = vrot.slane %v401_v33, 6 }
 0x64b   :  { %702 = vpow2.f32 %v652_v35 }
 0x655   :  { %v703_v36 = vpop.eup %702 }
 0x656   :  { %v457_v37 = vadd.f32 1.0, %v703_v36 }
 0x658   :  { %704 = vrcp.f32 %v457_v37 }
 0x662   :  { %v705_v38 = vpop.eup %704 }
 0x663   :  { %v475_v39 = vrot.slane %v705_v38, 2 }
 0x665   :  { %476 = vrot.lane.b32.xlu0 %v475_v39, %s847_s2 }
 0x6d7   :  { %v477_v41 = vpop.permute.xlu0 %476 }
 0x6d8   :  { %v479_v42 = vmul.f32 %v477_v41, %v473_v40 }
 0x6da   :  { %v481_v44 = vrot.slane %v479_v42, 6 }
 0x6dc   :  { %v1000_v45 = vadd.f32 %v938_v16, %v481_v44 }
 0x6de   :  { %v500_v46 = vmul.f32 %v1000_v45, %v928_v12  ;;  %v526_v7 = vsub.f32 %v1000_v45, %v985_v25  ;;  %v513_v35 = vmul.f32 %v1000_v45, %v150_v49 }
 0x6e0   :  { %v502_v47 = vrot.slane %v500_v46, 6  ;;  %v515_v37 = vrot.slane %v513_v35, 6 }
 0x6e2   :  { %503 = vrot.lane.b32.xlu1 %v502_v47, %s846_s21 }
 0x6e6   :  { %186 = vrot.lane.b32.xlu1 %v184_v50, %s848_s3 }
 0x754   :  { %v504_v51 = vpop.permute.xlu1 %503 }
 0x755   :  { %v506_v52 = vadd.f32 %v504_v51, %v980_v14 }
 0x757   :  { %v654_v53 = vmul.f32 -1.442695, %v506_v52 }
 0x758   :  { %v187_v6 = vpop.permute.xlu1 %186 }
 0x759   :  { %706 = vpow2.f32 %v654_v53 }
 0x763   :  { %v707_v54 = vpop.eup %706 }
 0x764   :  { %v510_v55 = vadd.f32 1.0, %v707_v54 }
 0x766   :  { %708 = vrcp.f32 %v510_v55 }
 0x770   :  { %v709_v58 = vpop.eup %708 }
 0x771   :  { %v528_v59 = vrot.slane %v709_v58, 2 }
 0x773   :  { %529 = vrot.lane.b32.xlu0 %v528_v59, %s847_s2 }
 0x777   :  { %166 = vrot.lane.b32.xlu0 %v164_v60, %s848_s3 }
 0x77b   :  { %240 = vrot.lane.b32.xlu0 %v239_v61, %s848_s3 }
 0x77f   :  { %350 = vrot.lane.b32.xlu0 %v349_v63, %s848_s3 }
 0x783   :  { %463 = vrot.lane.b32.xlu0 %v462_v1, %s848_s3 }
 0x7e5   :  { %v530_v2 = vpop.permute.xlu0 %529 }
 0x7e6   :  { %v532_v3 = vmul.f32 %v530_v2, %v526_v7 }
 0x7e8   :  { %v534_v4 = vrot.slane %v532_v3, 6 }
 0x7e9   :  { %v167_v5 = vpop.permute.xlu0 %166 }
 0x7ea   :  { %v1023_v8 = vadd.f32 %v938_v16, %v534_v4  ;;  %v169_v10 = vadd.f32 %v167_v5, %v940_v17  ;;  %v1027_v11 = vadd.f32 %v938_v16, %v167_v5 }
 0x7ec   :  { %v189_v18 = vadd.f32 %v187_v6, %v169_v10  ;;  %v566_v19 = vmul.f32 %v1023_v8, %v150_v49  ;;  %v553_v20 = vmul.f32 %v1023_v8, %v928_v12 }
 0x7ed   :  { %v241_v21 = vpop.permute.xlu0 %240 }
 0x7ee   :  { %v643_v23 = vmul.f32 -1.442695, %v189_v18  ;;  %v243_v24 = vadd.f32 %v241_v21, %v169_v10  ;;  %v568_v26 = vrot.slane %v566_v19, 6  ;;  %v555_v15 = vrot.slane %v553_v20, 6 }
 0x7f0   :  { %710 = vpow2.f32 %v643_v23  ;;  %v645_v27 = vmul.f32 -1.442695, %v243_v24  ;;  %569 = vrot.lane.b32.xlu0 %v568_v26, %s848_s3  ;;  %556 = vrot.lane.b32.xlu1 %v555_v15, %s846_s21 }
 0x7f1   :  { %v351_v29 = vpop.permute.xlu0 %350 }
 0x7f2   :  { %712 = vpow2.f32 %v645_v27  ;;  %v353_v31 = vadd.f32 %v351_v29, %v169_v10 }
 0x7f4   :  { %v649_v12 = vmul.f32 -1.442695, %v353_v31  ;;  %204 = vrot.lane.b32.xlu0 %v940_v17, %s846_s21  ;;  %296 = vrot.lane.b32.xlu1 %v295_v32, %s848_s3 }
 0x7f5   :  { %v464_v48 = vpop.permute.xlu0 %463 }
 0x7f6   :  { %714 = vpow2.f32 %v649_v12  ;;  %v466_v49 = vadd.f32 %v464_v48, %v1027_v11 }
 0x7f8   :  { %404 = vrot.lane.b32.xlu1 %v403_v34, %s848_s3  ;;  %v653_v54 = vmul.f32 -1.442695, %v466_v49 }
 0x7fa   :  { %v711_v36 = vpop.eup %710 }
 0x7fb   :  { %v193_v38 = vadd.f32 1.0, %v711_v36 }
 0x7fc   :  { %v713_v39 = vpop.eup %712  ;;  %516 = vrot.lane.b32.xlu1 %v515_v37, %s848_s3 }
 0x7fd   :  { %716 = vrcp.f32 %v193_v38  ;;  %v247_v40 = vadd.f32 1.0, %v713_v39 }
 0x7ff   :  { %718 = vrcp.f32 %v247_v40 }
 0x800   :  { %v715_v41 = vpop.eup %714  ;;  %428 = vrot.lane.b32.xlu1 %v938_v16, %s846_s21 }
 0x801   :  { %v357_v42 = vadd.f32 1.0, %v715_v41 }
 0x803   :  { %720 = vrcp.f32 %v357_v42 }
 0x807   :  { %v717_v44 = vpop.eup %716 }
 0x808   :  { %209 = vrot.lane.b32.xlu0 %v717_v44, %s848_s3 }
 0x809   :  { %v719_v46 = vpop.eup %718 }
 0x80a   :  { %265 = vrot.lane.b32.xlu1 %v719_v46, %s848_s3 }
 0x80d   :  { %v721_v47 = vpop.eup %720 }
 0x80e   :  { %373 = vrot.lane.b32.xlu1 %v721_v47, %s848_s3 }
 0x862   :  { %v557_v50 = vpop.permute.xlu1 %556  ;;  %v570_v51 = vpop.permute.xlu0 %569 }
 0x863   :  { %v559_v52 = vadd.f32 %v557_v50, %v980_v14  ;;  %v572_v55 = vadd.f32 %v570_v51, %v1027_v11 }
 0x865   :  { %v656_v53 = vmul.f32 -1.442695, %v559_v52  ;;  %v657_v60 = vmul.f32 -1.442695, %v572_v55 }
 0x866   :  { %v297_v56 = vpop.permute.xlu1 %296  ;;  %v205_v27 = vpop.permute.xlu0 %204 }
 0x867   :  { %v299_v58 = vadd.f32 %v297_v56, %v169_v10  ;;  %722 = vpow2.f32 %v656_v53  ;;  %v263_v12 = vsub.f32 %v957_v43, %v205_v27  ;;  %v207_v34 = vsub.f32 %v948_v28, %v205_v27 }
 0x868   :  { %724 = vpow2.f32 %v653_v54  ;;  %v371_v38 = vsub.f32 %v973_v9, %v205_v27  ;;  %v579_v43 = vsub.f32 %v1023_v8, %v985_v25  ;;  %v317_v28 = vsub.f32 %v965_v57, %v205_v27 }
 0x869   :  { %v647_v59 = vmul.f32 -1.442695, %v299_v58 }
 0x86a   :  { %v405_v13 = vpop.permute.xlu1 %404 }
 0x86b   :  { %726 = vpow2.f32 %v647_v59  ;;  %v407_v61 = vadd.f32 %v405_v13, %v1027_v11 }
 0x86c   :  { %728 = vpow2.f32 %v657_v60 }
 0x86d   :  { %v651_v62 = vmul.f32 -1.442695, %v407_v61 }
 0x86e   :  { %v517_v63 = vpop.permute.xlu1 %516 }
 0x86f   :  { %730 = vpow2.f32 %v651_v62  ;;  %v519_v14 = vadd.f32 %v517_v63, %v1027_v11 }
 0x871   :  { %v655_v0 = vmul.f32 -1.442695, %v519_v14  ;;  %v723_v1 = vpop.eup %722 }
 0x872   :  { %v563_v7 = vadd.f32 1.0, %v723_v1  ;;  %v725_v2 = vpop.eup %724  ;;  %v429_v24 = vpop.permute.xlu1 %428 }
 0x873   :  { %732 = vpow2.f32 %v655_v0  ;;  %v470_v5 = vadd.f32 1.0, %v725_v2  ;;  %v484_v47 = vsub.f32 %v1000_v45, %v429_v24  ;;  %v431_v48 = vsub.f32 %v990_v30, %v429_v24 }
 0x874   :  { %734 = vrcp.f32 %v563_v7  ;;  %v537_v45 = vsub.f32 %v1023_v8, %v429_v24 }
 0x875   :  { %v727_v3 = vpop.eup %726 }
 0x876   :  { %v303_v4 = vadd.f32 1.0, %v727_v3  ;;  %v729_v6 = vpop.eup %728 }
 0x877   :  { %v576_v19 = vadd.f32 1.0, %v729_v6 }
 0x878   :  { %736 = vrcp.f32 %v303_v4 }
 0x879   :  { %v731_v10 = vpop.eup %730  ;;  %738 = vrcp.f32 %v470_v5 }
 0x87a   :  { %v411_v18 = vadd.f32 1.0, %v731_v10  ;;  %v210_v33 = vpop.permute.xlu0 %209 }
 0x87b   :  { %v212_v36 = vmul.f32 %v210_v33, %v207_v34 }
 0x87c   :  { %740 = vrcp.f32 %v411_v18  ;;  %v266_v29 = vpop.permute.xlu1 %265 }
 0x87d   :  { %v733_v20 = vpop.eup %732  ;;  %742 = vrcp.f32 %v576_v19  ;;  %v268_v35 = vmul.f32 %v266_v29, %v263_v12 }
 0x87e   :  { %v523_v21 = vadd.f32 1.0, %v733_v20  ;;  %v735_v22 = vpop.eup %734 }
 0x87f   :  { %v581_v11 = vrot.slane %v735_v22, 2 }
 0x880   :  { %744 = vrcp.f32 %v523_v21  ;;  %v374_v37 = vpop.permute.xlu1 %373 }
 0x881   :  { %582 = vrot.lane.b32.xlu1 %v581_v11, %s847_s2  ;;  %v376_v39 = vmul.f32 %v374_v37, %v371_v38 }
 0x882   :  { %v737_v23 = vpop.eup %736 }
 0x883   :  { %319 = vrot.lane.b32.xlu0 %v737_v23, %s848_s3  ;;  %v739_v26 = vpop.eup %738 }
 0x885   :  { %486 = vrot.lane.b32.xlu1 %v739_v26, %s848_s3 }
 0x886   :  { %v741_v15 = vpop.eup %740 }
 0x887   :  { %433 = vrot.lane.b32.xlu0 %v741_v15, %s848_s3  ;;  %v743_v31 = vpop.eup %742 }
 0x889   :  { %592 = vrot.lane.b32.xlu1 %v743_v31, %s848_s3 }
 0x88a   :  { %v745_v32 = vpop.eup %744 }
 0x88b   :  { %539 = vrot.lane.b32.xlu0 %v745_v32, %s848_s3 }
 0x88d   :  { %270 = vrot.lane.b32.xlu1 %v268_v35, %s847_s2 }
 0x88f   :  { %214 = vrot.lane.b32.xlu0 %v212_v36, %s847_s2 }
 0x891   :  { %378 = vrot.lane.b32.xlu1 %v376_v39, %s847_s2 }
 0x8f3   :  { %v583_v40 = vpop.permute.xlu1 %582 }
 0x8f4   :  { %v585_v41 = vmul.f32 %v583_v40, %v579_v43 }
 0x8f5   :  { %v320_v42 = vpop.permute.xlu0 %319 }
 0x8f6   :  { %v322_v44 = vmul.f32 %v320_v42, %v317_v28  ;;  %v587_v46 = vrot.slane %v585_v41, 6 }
 0x8f7   :  { %v487_v9 = vpop.permute.xlu1 %486 }
 0x8f8   :  { %324 = vrot.lane.b32.xlu0 %v322_v44, %s847_s2  ;;  %v589_v49 = vadd.f32 %v938_v16, %v587_v46  ;;  %v489_v50 = vmul.f32 %v487_v9, %v484_v47 }
 0x8f9   :  { %v434_v51 = vpop.permute.xlu0 %433 }
 0x8fa   :  { %v436_v25 = vmul.f32 %v434_v51, %v431_v48  ;;  %491 = vrot.lane.b32.xlu1 %v489_v50, %s847_s2  ;;  %v590_v57 = vsub.f32 %v589_v49, %v429_v24  ;;  %606 = vst.msk [vmem:[#allocation2 - $0x6] sm:$0xc0] %vm386_vm2, %v589_v49  ;;  %607 = vst.msk [vmem:[#allocation9 - $0x6] sm:$0xc0] %vm386_vm2, %v589_v49 }
 0x8fb   :  { %v593_v52 = vpop.permute.xlu1 %592 }
 0x8fc   :  { %438 = vrot.lane.b32.xlu0 %v436_v25, %s847_s2  ;;  %v595_v53 = vmul.f32 %v593_v52, %v590_v57 }
 0x8fd   :  { %v540_v30 = vpop.permute.xlu0 %539 }
 0x8fe   :  { %v542_v54 = vmul.f32 %v540_v30, %v537_v45  ;;  %597 = vrot.lane.b32.xlu1 %v595_v53, %s847_s2 }
 0x8ff   :  { %v271_v55 = vpop.permute.xlu1 %270 }
 0x900   :  { %544 = vrot.lane.b32.xlu0 %v542_v54, %s847_s2  ;;  %v273_v56 = vadd.f32 %v271_v55, %v940_v17 }
 0x901   :  { %v215_v58 = vpop.permute.xlu0 %214 }
 0x902   :  { %v217_v59 = vadd.f32 %v215_v58, %v940_v17  ;;  %275 = vrot.lane.b32.xlu1 %v273_v56, %s846_s21 }
 0x903   :  { %v379_v60 = vpop.permute.xlu1 %378 }
 0x904   :  { %219 = vrot.lane.b32.xlu0 %v217_v59, %s846_s21  ;;  %v381_v8 = vadd.f32 %v379_v60, %v940_v17 }
 0x906   :  { %383 = vrot.lane.b32.xlu1 %v381_v8, %s846_s21 }
 0x96a   :  { %v325_v13 = vpop.permute.xlu0 %324 }
 0x96b   :  { %801 = shalt.err (!%p798_p6)
}
 0x96c   :  { %s802_s27 = scalar_lea.hbm %s1130_s5, 32 }
 0x96d   :  { %p803_p7 = scmp.ne.s32.totalorder %s1130_s5, %s802_s27  ;;  %p806_p8 = scmp.lt.u32.totalorder %s802_s27, %s1130_s5 }
 0x96f   :  { %p808_p9 = pnand %p806_p8, %p803_p7 }
 0x971   :  { %811 = shalt.err (!%p808_p9)
}
 0x972   :  { %629 = dma.vmem_to_hbm [thread:$0]  %s627_s23, 32, %s1130_s5, [#allocation10]   ;;  %v327_v61 = vadd.f32 %v325_v13, %v940_v17  ;;  %v492_v62 = vpop.permute.xlu1 %491  ;;  %v439_v14 = vpop.permute.xlu0 %438  ;;  %vm278_vm3 = vcmask 257026   ;;  %vm332_vm4 = vcmask 259076  }
 0x973   :  { %v494_v63 = vadd.f32 %v938_v16, %v492_v62  ;;  %v441_v0 = vadd.f32 %v938_v16, %v439_v14  ;;  %s850_s5 = smov [#allocation8]  }
 0x974   :  { %329 = vrot.lane.b32.xlu0 %v327_v61, %s846_s21  ;;  %s613_s11 = sshll.u32 %s850_s5, 4  ;;  %s614_s11 = int_to_ptr.vmem [resolvable:$true] %s613_s11 }
 0x975   :  { %496 = vrot.lane.b32.xlu1 %v494_v63, %s846_s21  ;;  %s812_s12 = scalar_lea.vmem %s614_s11, 256  ;;  %p817_p11 = scmp.lt.s32.totalorder %s614_s11, %s614_s11 }
 0x976   :  { %v598_v1 = vpop.permute.xlu1 %597  ;;  %v545_v2 = vpop.permute.xlu0 %544  ;;  %p813_p10 = scmp.ne.s32.totalorder %s614_s11, %s812_s12  ;;  %p818_p12 = scmp.lt.s32.totalorder %s812_s12, %s812_s12 }
 0x977   :  { %v600_v7 = vadd.f32 %v938_v16, %v598_v1  ;;  %v547_v3 = vadd.f32 %v938_v16, %v545_v2 }
 0x978   :  { %443 = vrot.lane.b32.xlu0 %v441_v0, %s846_s21  ;;  %p819_p13 = por %p818_p12, %p817_p11 }
 0x979   :  { %602 = vrot.lane.b32.xlu1 %v600_v7, %s846_s21 }
 0x97a   :  { %v276_v17 = vpop.permute.xlu1 %275  ;;  %v220_v4 = vpop.permute.xlu0 %219  ;;  %p820_p0 = pnand %p819_p13, %p813_p10 }
 0x97b   :  { %279 = vst.msk [vmem:[#allocation8] sm:$0xc] %vm278_vm3, %v276_v17 }
 0x97c   :  { %549 = vrot.lane.b32.xlu0 %v547_v3, %s846_s21  ;;  %223 = vst.msk [vmem:[#allocation8] sm:$0x3] %vm54_vm1, %v220_v4 }
 0x97e   :  { %v384_v5 = vpop.permute.xlu1 %383 }
 0x97f   :  { %387 = vst.msk [vmem:[#allocation8] sm:$0xc0] %vm386_vm2, %v384_v5 }
 0x9e6   :  { %v330_v6 = vpop.permute.xlu0 %329 }
 0x9e7   :  { %333 = vst.msk [vmem:[#allocation8] sm:$0x30] %vm332_vm4, %v330_v6  ;;  %v497_v10 = vpop.permute.xlu1 %496 }
 0x9e8   :  { %499 = vst.msk [vmem:[#allocation8 + $0x8] sm:$0xc] %vm278_vm3, %v497_v10 }
 0x9ea   :  { %v444_v18 = vpop.permute.xlu0 %443 }
 0x9eb   :  { %446 = vst.msk [vmem:[#allocation8 + $0x8] sm:$0x3] %vm54_vm1, %v444_v18  ;;  %v603_v16 = vpop.permute.xlu1 %602 }
 0x9ec   :  { %605 = vst.msk [vmem:[#allocation8 + $0x8] sm:$0xc0] %vm386_vm2, %v603_v16 }
 0x9ee   :  { %v550_v19 = vpop.permute.xlu0 %549 }
 0x9ef   :  { %552 = vst.msk [vmem:[#allocation8 + $0x8] sm:$0x30] %vm332_vm4, %v550_v19 }
 0x9f0   :  { %823 = shalt.err (!%p820_p0)
}
 0x9f1   :  { %s824_s15 = scalar_lea.hbm %s1129_s4, 256 }
 0x9f2   :  { %p825_p1 = scmp.ne.s32.totalorder %s1129_s4, %s824_s15  ;;  %p828_p2 = scmp.lt.u32.totalorder %s824_s15, %s1129_s4 }
 0x9f4   :  { %p830_p3 = pnand %p828_p2, %p825_p1 }
 0x9f6   :  { %833 = shalt.err (!%p830_p3)
}
 0x9f7   :  { %619 = dma.vmem_to_hbm [thread:$0]  %s614_s11, 256, %s1129_s4, [#allocation5], %s843_s28, %s843_s28, %s844_s29  }
 0x9f8   :  { %838 = dma.done.wait [#allocation5], 256  }
 0x9f9   :  { %839 = vsyncadd [#allocation5], 4294967040 }
 0x9fa   :  { %840 = dma.done.wait [#allocation10], 32  }
 0x9fb   :  { %841 = vsyncadd [#allocation10], 4294967264 }
 0x9fc   :  { %636 = vsyncpa [#allocation4], 1 }
 0x9fd   :  { %637 = vsyncpa [#allocation7], 1 }
 0x9fe   :  { %638 = vsyncpa [#allocation5], 1 }
 0x9ff   :  { %639 = vsyncpa [#allocation10], 1 }

</bundles_post_ra>
